<compile_context>
chip_gen: v6e
topology: v6e:2x2x1
jax: 0.10.0
libtpu: 0.0.40
codegen_flags: <defaults>
</compile_context>

<pallas_src>
import functools

import jax
import jax.numpy as jnp
from jax.experimental import pallas as pl
from jax.experimental.pallas import tpu as pltpu


def _mlp_kernel(x_ref, w_ref, b_ref, o_ref):
    # x arrives f32 (no wrapper-side cast); cast to bf16 in-kernel (free VPU
    # work under the DMA), MXU matmul with f32 accumulation, f32 bias epilogue.
    acc = jnp.dot(x_ref[...].astype(jnp.bfloat16), w_ref[...],
                  preferred_element_type=jnp.float32)
    o_ref[...] = (acc + b_ref[...]).astype(o_ref.dtype)


def _round_up(x, m):
    return (x + m - 1) // m * m


@functools.partial(jax.jit, static_argnames=("block_b", "block_n"))
def _mlp_forward_padded(x_pad, w_bf16, b_f32, *, block_b, block_n):
    """x_pad: (Bp, in_dim) f32, Bp % block_b == 0. w_bf16: (in_dim, out) bf16.
    b_f32: (1, out) f32. Returns (Bp, out) f32."""
    Bp, in_dim = x_pad.shape
    out = w_bf16.shape[1]

    flops = 2 * Bp * in_dim * out
    bytes_accessed = (Bp * in_dim * 4      # x (f32), read once
                      + in_dim * out * 2   # W (bf16), VMEM-resident, read once
                      + out * 4            # bias (f32)
                      + Bp * out * 4)      # y (f32)
    cost = pl.CostEstimate(flops=flops, transcendentals=0,
                           bytes_accessed=bytes_accessed)

    if block_n == out:
        # 1-D grid over batch tiles. W/bias index maps are constant, so the
        # collapsed weight is fetched once and stays resident in VMEM.
        grid = (Bp // block_b,)
        in_specs = [
            pl.BlockSpec((block_b, in_dim), lambda i: (i, 0)),
            pl.BlockSpec((in_dim, out), lambda i: (0, 0)),
            pl.BlockSpec((1, out), lambda i: (0, 0)),
        ]
        out_specs = pl.BlockSpec((block_b, out), lambda i: (i, 0))
        dims = ("parallel",)
    else:
        # Small-batch fallback (single batch tile): split output columns so a
        # 2-TC chip (v7x) still has >=2 parallel grid steps. Each 128-wide W
        # slab is still read exactly once (batch grid has one step).
        grid = (Bp // block_b, out // block_n)
        in_specs = [
            pl.BlockSpec((block_b, in_dim), lambda i, j: (i, 0)),
            pl.BlockSpec((in_dim, block_n), lambda i, j: (0, j)),
            pl.BlockSpec((1, block_n), lambda i, j: (0, j)),
        ]
        out_specs = pl.BlockSpec((block_b, block_n), lambda i, j: (i, j))
        dims = ("parallel", "parallel")

    return pl.pallas_call(
        _mlp_kernel,
        out_shape=jax.ShapeDtypeStruct((Bp, out), jnp.float32),
        grid_spec=pltpu.PrefetchScalarGridSpec(
            num_scalar_prefetch=0,
            grid=grid,
            in_specs=in_specs,
            out_specs=out_specs,
        ),
        compiler_params=pltpu.CompilerParams(dimension_semantics=dims),
        cost_estimate=cost,
    )(x_pad, w_bf16, b_f32)


def _choose_block_b(B, block_b):
    """Pick a sublane-aligned row tile; prefer one that divides B (no padding)."""
    cap = _round_up(min(block_b, _round_up(B, 8)), 8)
    for cand in range(cap, 7, -8):
        if B % cand == 0:
            return cand, B                  # exact fit, no pad copy of x
    return cap, _round_up(B, cap)           # pad only the partial final tile


def mlp_forward(x, w_collapsed, b_collapsed, *, block_b=512):
    """Forward pass of the (collapsed) MLP.

    x: (B, in_dim) f32. w_collapsed: (in_dim, out). b_collapsed: (out,).
    """
    B, in_dim = x.shape
    out = w_collapsed.shape[1]

    eff_b, Bp = _choose_block_b(B, block_b)
    x = x.astype(jnp.float32)
    x_pad = x if Bp == B else jnp.pad(x, ((0, Bp - B), (0, 0)))

    # Column tiling: full-width output (1-D grid) when the batch axis already
    # provides >=2 parallel tiles; otherwise 128-wide column split so v7x's
    # two TensorCores both get work on tiny batches.
    if Bp // eff_b >= 2 or out % 128 != 0 or out <= 128:
        eff_n = out
    else:
        eff_n = 128

    y = _mlp_forward_padded(
        x_pad,
        w_collapsed.astype(jnp.bfloat16),
        b_collapsed.astype(jnp.float32).reshape(1, out),
        block_b=eff_b,
        block_n=eff_n,
    )
    return y[:B]


def collapse_mlp_params(params):
    """Fold the activation-free Linear stack into a single affine map (f32).

    Valid ONLY because this MLP has no nonlinearities between Linear layers
    (see the PyTorch spec); if an activation is ever added, do NOT collapse.

    params: list of (W, b) with W shaped (fan_in, fan_out).
    Returns (W_collapsed, b_collapsed) with W_collapsed: (in_dim, out_dim).
    """
    w, b = params[0]
    w = w.astype(jnp.float32)
    b = b.astype(jnp.float32)
    for wi, bi in params[1:]:
        wi = wi.astype(jnp.float32)
        bi = bi.astype(jnp.float32)
        b = b @ wi + bi
        w = w @ wi
    return w, b


def init_mlp_params(key, in_dim=1280, out_dim=256, n_hidden=1, dtype=jnp.float32):
    """Same layer-dimension logic as the PyTorch __init__.

    Returns list of (W, b) with W stored as (fan_in, fan_out).
    Init mimics torch.nn.Linear default: U(-1/sqrt(fan_in), 1/sqrt(fan_in)).
    """
    dims = []
    _in = in_dim
    for _ in range(n_hidden):
        nxt = _in // 2 if _in >= 2 * out_dim else out_dim
        dims.append((_in, nxt))
        _in = nxt
    dims.append((_in, out_dim))

    params = []
    for (fan_in, fan_out) in dims:
        key, kw, kb = jax.random.split(key, 3)
        bound = 1.0 / (fan_in ** 0.5)
        w = jax.random.uniform(kw, (fan_in, fan_out), dtype, -bound, bound)
        b = jax.random.uniform(kb, (fan_out,), dtype, -bound, bound)
        params.append((w, b))
    return params


if __name__ == "__main__":
    key = jax.random.PRNGKey(0)
    in_dim, out_dim, n_hidden = 1280, 256, 1

    params = init_mlp_params(key, in_dim=in_dim, out_dim=out_dim, n_hidden=n_hidden)
    w_c, b_c = collapse_mlp_params(params)  # (1280, 256), (256,)

    def ref_forward(x):
        y = x
        for wi, bi in params:
            y = y @ wi + bi
        return y

    ok = True
    # batch=16 exercises the small-batch 2-D (column-split) fallback path;
    # batch=1024 exercises the 1-D batch grid with VMEM-resident weight.
    for batch in (16, 1024):
        key, kx = jax.random.split(key)
        x = jax.random.normal(kx, (batch, in_dim), jnp.float32)

        y = mlp_forward(x, w_c, b_c, block_b=512)
        y = jax.block_until_ready(y)
        y_ref = ref_forward(x)

        assert y.shape == (batch, out_dim)
        max_err = float(jnp.max(jnp.abs(y - y_ref)))
        if not jnp.allclose(y, y_ref, atol=5e-2, rtol=5e-2):
            ok = False
            print(f"mismatch at batch={batch}, max_abs_err={max_err}")

    assert ok, "kernel output mismatch vs f32 reference"
    print("KERNEL_OK")
</pallas_src>

<mosaic_0001>
module attributes {stable_mosaic.version = 11 : i64} {
  func.func @_mlp_kernel(%arg0: i32, %arg1: i32, %arg2: memref<16x1280xf32, #tpu.memory_space<vmem>>, %arg3: memref<1280x128xbf16, #tpu.memory_space<vmem>>, %arg4: memref<1x128xf32, #tpu.memory_space<vmem>>, %arg5: memref<16x128xf32, #tpu.memory_space<vmem>>) attributes {dimension_semantics = [#tpu.dimension_semantics<parallel>, #tpu.dimension_semantics<parallel>], iteration_bounds = array<i64: 1, 2>, scalar_prefetch = 0 : i64, scratch_operands = 0 : i64, tpu.core_type = #tpu.core_type<tc>, window_params = [{transform_indices = @transform_0, window_bounds = array<i64: 16, 1280>}, {transform_indices = @transform_1, window_bounds = array<i64: 1280, 128>}, {transform_indices = @transform_2, window_bounds = array<i64: 1, 128>}, {transform_indices = @transform_3, window_bounds = array<i64: 16, 128>}]} {
    %c0 = arith.constant 0 : index
    %c0_0 = arith.constant 0 : index
    %0 = vector.load %arg2[%c0, %c0_0] : memref<16x1280xf32, #tpu.memory_space<vmem>>, vector<16x1280xf32>
    %1 = arith.truncf %0 : vector<16x1280xf32> to vector<16x1280xbf16>
    %c0_1 = arith.constant 0 : index
    %c0_2 = arith.constant 0 : index
    %2 = vector.load %arg3[%c0_1, %c0_2] : memref<1280x128xbf16, #tpu.memory_space<vmem>>, vector<1280x128xbf16>
    %cst = arith.constant dense<0.000000e+00> : vector<16x128xf32>
    %3 = tpu.matmul %1, %2, %cst {dimension_numbers = #tpu.dot_dimension_numbers<[1], [0], [0], [1], [0, 0, 1, 1], [], []>} : vector<16x1280xbf16>, vector<1280x128xbf16>, vector<16x128xf32> -> vector<16x128xf32>
    %c0_3 = arith.constant 0 : index
    %c0_4 = arith.constant 0 : index
    %4 = vector.load %arg4[%c0_3, %c0_4] : memref<1x128xf32, #tpu.memory_space<vmem>>, vector<1x128xf32>
    %5 = vector.broadcast %4 : vector<1x128xf32> to vector<16x128xf32>
    %6 = arith.addf %3, %5 : vector<16x128xf32>
    %c0_5 = arith.constant 0 : index
    %c0_6 = arith.constant 0 : index
    %7 = vector.load %arg5[%c0_5, %c0_6] : memref<16x128xf32, #tpu.memory_space<vmem>>, vector<16x128xf32>
    tpu.vector_store %arg5[%c0_5, %c0_6], %6 {strides = array<i32>} : memref<16x128xf32, #tpu.memory_space<vmem>>, vector<16x128xf32>,
    return
  }
  func.func @transform_0(%arg0: i32, %arg1: i32) -> (i32, i32) {
    %c0_i32 = arith.constant 0 : i32
    %c0_i32_0 = arith.constant 0 : i32
    return %arg0, %c0_i32 : i32, i32
  }
  func.func @transform_1(%arg0: i32, %arg1: i32) -> (i32, i32) {
    %c0_i32 = arith.constant 0 : i32
    %c0_i32_0 = arith.constant 0 : i32
    return %c0_i32, %arg1 : i32, i32
  }
  func.func @transform_2(%arg0: i32, %arg1: i32) -> (i32, i32) {
    %c0_i32 = arith.constant 0 : i32
    %c0_i32_0 = arith.constant 0 : i32
    return %c0_i32, %arg1 : i32, i32
  }
  func.func @transform_3(%arg0: i32, %arg1: i32) -> (i32, i32) {
    %c0_i32 = arith.constant 0 : i32
    return %arg0, %arg1 : i32, i32
  }
}

</mosaic_0001>

<bundles_post_ra>
// kernel: _mlp_forward_padded.1
= control target key start
LH: loop header
LB: loop body
LE: loop exit
PB: predicated region body
PF: predicated region fallthrough
CT: control target
= control target key end

     0   :  { %8 = vsyncpa [#allocation3], 0  ;;  %s2050_s0 = inlined_call_operand.hbm [shape: f32[16,1280], index: 0, kind: input, shape index: {}]   ;;  %s2051_s1 = inlined_call_operand.hbm [shape: bf16[1280,256], index: 1, kind: input, shape index: {}]   ;;  %s2052_s2 = inlined_call_operand.vmem [shape: f32[1,256], index: 2, kind: input, shape index: {}]   ;;  %s2053_s3 = inlined_call_operand.hbm [shape: f32[16,256], index: 3, kind: output, shape index: {}]  }
   0x1   :  { %9 = vsyncpa [#allocation6], 0 }
   0x2   :  { %11 = vsyncpa [#allocation6 + $0x1], 0 }
   0x3   :  { %12 = vsyncpa [#allocation4], 0 }
   0x4   :  { %14 = vsyncpa [#allocation4 + $0x1], 0  ;;  %s1787_s12 = smov 0   ;;  %s1789_s13 = smov 0  }
   0x5   :  { %s1791_s14 = smov 0   ;;  %s1793_s15 = smov 0  }
   0x6   :  { %s1795_s16 = smov 0   ;;  %s1797_s17 = smov 0  }
   0x7 LB: > { %2059 = sst [smem:[#allocation11_spill]] %s1754_s17  ;;  %s1249_s18 = sadd.s32 4294967295, %s1754_s17   ;;  %s1754_s17 = sphi %s1797_s17, %s20_s17   ;;  %s1750_s16 = sphi %s1795_s16, %s2079_s16   ;;  %s1746_s15 = sphi %s1793_s15, %s2078_s15   ;;  %s1742_s14 = sphi %s1791_s14, %s2077_s14   ;;  %s1738_s13 = sphi %s1789_s13, %s2076_s13   ;;  %s1734_s12 = sphi %s1787_s12, %s2075_s12  }
   0x8   : > { %s1250_s19 = sadd.s32 4294967294, %s1754_s17   ;;  %p72_p0 = scmp.ne.s32.totalorder %s1742_s14, %s1738_s13 }
   0x9   : > { %p73_p1 = scmp.eq.s32.totalorder %s1754_s17, 0  ;;  %p78_p2 = scmp.ne.s32.totalorder %s1738_s13, %s1734_s12 }
   0xa   : > { %p1824_p3 = scmp.eq.s32.totalorder %s1249_s18, 0  ;;  %p130_p5 = scmp.eq.s32.totalorder %s1249_s18, 1 }
   0xb   : > { %p1828_p4 = por %p73_p1, %p72_p0  ;;  %p136_p7 = scmp.eq.s32.totalorder %s1250_s19, 1 }
   0xc   : > { %p1834_p6 = por %p1824_p3, %p78_p2  ;;  %p1838_p8 = por %p130_p5, %p72_p0 }
   0xd   : > { %p1251_p9 = scmp.ge.s32.totalorder %s1754_s17, 1  ;;  %p1843_p10 = por %p136_p7, %p78_p2 }
   0xe   : > { %s2062_s22 = scalar_select %p1834_p6, 1, 0 }
   0xf   : > { %s2063_s23 = scalar_select %p1838_p8, 1, 0 }
  0x10   : > { %s2064_s24 = scalar_select %p1843_p10, 1, 0 }
  0x11   : > { %p143_p11 = scmp.lt.s32.totalorder %s1754_s17, 3  ;;  %s1756_s26 = smov [#allocation2]  }
  0x12   : > { %2065 = sst [smem:[#allocation12_spill]] %s2064_s24  ;;  %s159_s27 = sshll.u32 %s1756_s26, 4  ;;  %s160_s27 = int_to_ptr.vmem [resolvable:$true] %s159_s27 }
  0x13   : > { %p1848_p12 = pnand %p1251_p9, %p143_p11  ;;  %p1476_p1 = scmp.lt.s32.totalorder %s1754_s17, 2 }
  0x14   : > { %s29_s30 = sadd.s32 1, %s1750_s16  ;;  %s1627_s4 = scalar_lea.vmem %s160_s27, 2560 }
  0x15   : > { %p1463_p13 = pneg %p1848_p12  ;;  %p1864_p2 = pnand %p1476_p1, %p1828_p4 }
  0x16   : > { %p1628_p9 = scmp.ne.s32.totalorder %s160_s27, %s1627_s4  ;;  %p1635_p0 = scmp.lt.s32.totalorder %s160_s27, %s160_s27 }
  0x17   : > { %p1858_p5 = pnand %p1463_p13, %p1824_p3  ;;  %p1636_p8 = scmp.lt.s32.totalorder %s1627_s4, %s1627_s4 }
  0x19   : > { %p1618_p7 = pneg %p1858_p5  ;;  %p1637_p6 = por %p1636_p8, %p1635_p0 }
  0x1b   : > { %p1630_p11 = pnand %p1628_p9, %p1618_p7 }
  0x1d   : > { %p1631_p10 = pneg %p1630_p11 }
  0x1f   : > { %p1638_p13 = pnand %p1637_p6, %p1631_p10 }
  0x21   : > { %1641 = shalt.err (!%p1638_p13)
}
  0x22   : > { %s1757_s5 = smov 1280   ;;  %s1758_s6 = smov 80  }
  0x23   : > { %1466 = dma.hbm_to_vmem [thread:$0]  (!%p1858_p5), %s2050_s0, 2560, %s160_s27, [#allocation3], %s1757_s5, %s1757_s5, %s1758_s6  }
  0x24   : > { %p30_p4 = scmp.ge.s32.totalorder %s29_s30, 2  ;;  %s65_s9 = sadd.s32 1, %s1742_s14 }
  0x25   : > { %s173_s10 = sand.u32 1, %s1742_s14   ;;  %s1254_s19 = sshll.u32 %s1750_s16, 6 }
  0x26   : > { %s2081_s30 = smov (%p30_p4, %s29_s30), 0  ;;  %s1453_s11 = smul.u32 640, %s173_s10 }
  0x27   : > { %s62_s18 = ssub.s32 %s1750_s16, %s2081_s30  ;;  %s182_s4 = scalar_lea.hbm %s2051_s1, %s1254_s19 }
  0x28   : > { %p63_p6 = scmp.eq.s32.totalorder %s62_s18, 0  ;;  %s177_s28 = scalar_lea.vmem [#allocation5], %s1453_s11 }
  0x29   : > { %s183_s17 = sshll.u32 %s177_s28, 4  ;;  %s174_s27 = scalar_lea.sflag [#allocation6], %s173_s10  ;;  %s184_s17 = int_to_ptr.vmem [resolvable:$true] %s183_s17 }
  0x2a   : > { %s1887_s24 = scalar_select %p63_p6, %s1742_s14, %s65_s9  }
  0x2b   : > { %p1644_p8 = pneg %p1864_p2  ;;  %s1655_s5 = scalar_lea.vmem %s184_s17, 10240 }
  0x2c   : > { %p1656_p10 = scmp.ne.s32.totalorder %s184_s17, %s1655_s5  ;;  %s1759_s6 = smov [#allocation5]  }
  0x2d   : > { %s1660_s7 = sshll.u32 %s1759_s6, 4  ;;  %s1661_s7 = int_to_ptr.vmem [resolvable:$false] %s1660_s7 }
  0x2e   : > { %p1658_p0 = pnand %p1656_p10, %p1644_p8  ;;  %s1662_s8 = scalar_lea.vmem %s1661_s7, 20480 }
  0x2f   : > { %p1663_p5 = scmp.lt.s32.totalorder %s184_s17, %s1661_s7  ;;  %p1664_p7 = scmp.lt.s32.totalorder %s1662_s8, %s1655_s5 }
  0x30   : > { %p1659_p1 = pneg %p1658_p0 }
  0x31   : > { %p1665_p9 = por %p1664_p7, %p1663_p5 }
  0x33   : > { %p1666_p11 = pnand %p1665_p9, %p1659_p1 }
  0x35   : > { %1669 = shalt.err (!%p1666_p11)
}
  0x36   : > { %s1760_s11 = smov 128   ;;  %s1761_s9 = smov 64  }
  0x37   : > { %s1762_s18 = smov 4   ;;  %201 = sbr.rel (%p1848_p12) target bundleno = 381 (0x17d), region = 32 }
  0x38   : > { %1470 = dma.hbm_to_vmem [thread:$0]  (!%p1864_p2), %s182_s4, 10240, %s184_s17, %s174_s27, %s1760_s11, %s1761_s9, %s1762_s18  }
  0x3c   : > { %1721 = dma.done.wait (%p1824_p3), [#allocation3], 2560  }
  0x3d   : > { %1723 = vsyncadd (%p1824_p3), [#allocation3], 4294964736  ;;  %s1900_s10 = sand.u32 1, %s1738_s13   ;;  %p2069_p2 = scmp.ne.s32.totalorder %s2062_s22, 0 }
  0x3e   : > { %s1454_s19 = smul.u32 640, %s1900_s10  ;;  %s208_s21 = scalar_lea.sflag [#allocation6], %s1900_s10 }
  0x40   : > { %s1904_s26 = scalar_lea.vmem [#allocation5], %s1454_s19 }
  0x41   : > { %1725 = dma.done.wait (%p2069_p2), %s208_s21, 10240  }
  0x42   : > { %1727 = vsyncadd (%p2069_p2), %s208_s21, 4294957056  ;;  %v1536_v0 = vld [vmem:[%s1904_s26 + $0x78] sm:$0xff]   ;;  %v1540_v4 = vld [vmem:[%s1904_s26 + $0x70] sm:$0xff]   ;;  %p238_p3 = scmp.lt.s32.totalorder %s1746_s15, 1  ;;  %s1257_s29 = sshll.u32 %s1900_s10, 4 }
  0x43   : > { %v1537_v1 = vld [vmem:[%s1904_s26 + $0x38] sm:$0xff]   ;;  %1343 = vmatprep.subr.bf16.mxu0 %v1536_v0  ;;  %v1541_v5 = vld [vmem:[%s1904_s26 + $0x30] sm:$0xff]   ;;  %v1544_v8 = vld [vmem:[%s1904_s26 + $0x68] sm:$0xff]   ;;  %s236_s4 = scalar_lea.vmem [#allocation7], %s1257_s29  ;;  %s1340_s27 = sshll.u32 %s1746_s15, 7 }
  0x44   : > { %v1538_v2 = vld [vmem:[%s1904_s26 + $0xf8] sm:$0xff]   ;;  %1344 = vmatpush3.bf16.msra.mxu0 %v1537_v1  ;;  %v1542_v6 = vld [vmem:[%s1904_s26 + $0xf0] sm:$0xff]   ;;  %v1545_v9 = vld [vmem:[%s1904_s26 + $0x28] sm:$0xff]   ;;  %s239_s17 = scalar_select %p238_p3, %s1746_s15, 1 }
  0x45   : > { %v1539_v3 = vld [vmem:[%s1904_s26 + $0xb8] sm:$0xff]   ;;  %1365 = vmatprep.subr.bf16.mxu1 %v1538_v2  ;;  %1345 = vmatprep.subr.bf16.mxu0 %v1540_v4  ;;  %v1543_v7 = vld [vmem:[%s1904_s26 + $0xb0] sm:$0xff]   ;;  %v1546_v10 = vld [vmem:[%s1904_s26 + $0xe8] sm:$0xff]   ;;  %s1143_s28 = sshll.u32 %s236_s4, 4  ;;  %s2002_s7 = scalar_lea.hbm %s2053_s3, %s1340_s27  ;;  %s1997_s28 = int_to_ptr.vmem [resolvable:$true] %s1143_s28 }
  0x46   : > { %1366 = vmatpush3.bf16.msra.mxu1 %v1539_v3  ;;  %v1547_v11 = vld [vmem:[%s1904_s26 + $0xa8] sm:$0xff]   ;;  %v1548_v12 = vld [vmem:[%s1904_s26 + $0x60] sm:$0xff]   ;;  %v1552_v16 = vld [vmem:[%s1904_s26 + $0x58] sm:$0xff]   ;;  %s240_s25 = scalar_lea.vmem %s2052_s2, %s239_s17  ;;  %s1128_s8 = scalar_lea.sflag [#allocation4], %s1900_s10 }
  0x47   : > { %1367 = vmatprep.subr.bf16.mxu1 %v1542_v6  ;;  %v1549_v13 = vld [vmem:[%s1904_s26 + $0x20] sm:$0xff]   ;;  %v1553_v17 = vld [vmem:[%s1904_s26 + $0x18] sm:$0xff]   ;;  %v1556_v20 = vld [vmem:[%s1904_s26 + $0x50] sm:$0xff]   ;;  %s1670_s11 = scalar_lea.vmem %s1997_s28, 256  ;;  %p2070_p13 = scmp.ne.s32.totalorder %s2063_s23, 0 }
  0x48   : > { %1346 = vmatpush3.bf16.msra.mxu0 %v1541_v5  ;;  %v1550_v14 = vld [vmem:[%s1904_s26 + $0xe0] sm:$0xff]   ;;  %v1554_v18 = vld [vmem:[%s1904_s26 + $0xd8] sm:$0xff]   ;;  %v1557_v21 = vld [vmem:[%s1904_s26 + $0x10] sm:$0xff]   ;;  %p1671_p12 = scmp.ne.s32.totalorder %s1997_s28, %s1670_s11  ;;  %s1763_s15 = smov [#allocation7]  }
  0x49   : > { %1347 = vmatprep.subr.bf16.mxu0 %v1544_v8  ;;  %v1551_v15 = vld [vmem:[%s1904_s26 + $0xa0] sm:$0xff]   ;;  %v1555_v19 = vld [vmem:[%s1904_s26 + $0x98] sm:$0xff]   ;;  %v1558_v22 = vld [vmem:[%s1904_s26 + $0xd0] sm:$0xff]   ;;  %s1674_s9 = sshll.u32 %s1763_s15, 4  ;;  %s1675_s9 = int_to_ptr.vmem [resolvable:$false] %s1674_s9 }
  0x4a   : > { %1368 = vmatpush3.bf16.msra.mxu1 %v1543_v7  ;;  %v1559_v23 = vld [vmem:[%s1904_s26 + $0x90] sm:$0xff]   ;;  %v1560_v24 = vld [vmem:[%s1904_s26 + $0x48] sm:$0xff]   ;;  %v1564_v28 = vld [vmem:[%s1904_s26 + $0x40] sm:$0xff]   ;;  %p1672_p4 = pnand %p1671_p12, %p2070_p13  ;;  %s1676_s18 = scalar_lea.vmem %s1675_s9, 512 }
  0x4b   : > { %1369 = vmatprep.subr.bf16.mxu1 %v1546_v10  ;;  %v1561_v25 = vld [vmem:[%s1904_s26 + $0x8] sm:$0xff]   ;;  %v1565_v29 = vld [vmem:[%s1904_s26] sm:$0xff]   ;;  %v254_v32 = vld [vmem:[#allocation2 + $0x58] sm:$0xff]  ;;  %p1677_p8 = scmp.lt.s32.totalorder %s1997_s28, %s1675_s9  ;;  %p1678_p10 = scmp.lt.s32.totalorder %s1676_s18, %s1670_s11 }
  0x4c   : > { %1348 = vmatpush3.bf16.msra.mxu0 %v1545_v9  ;;  %v1562_v26 = vld [vmem:[%s1904_s26 + $0xc8] sm:$0xff]   ;;  %v1566_v30 = vld [vmem:[%s1904_s26 + $0xc0] sm:$0xff]   ;;  %v253_v36 = vld [vmem:[#allocation2 + $0x50] sm:$0xff]  ;;  %p1673_p6 = pneg %p1672_p4 }
  0x4d   : > { %1349 = vmatprep.subr.bf16.mxu0 %v1548_v12  ;;  %v1563_v27 = vld [vmem:[%s1904_s26 + $0x88] sm:$0xff]   ;;  %v1567_v34 = vld [vmem:[%s1904_s26 + $0x80] sm:$0xff]   ;;  %v1568_v38 = vld [vmem:[%s1904_s26 + $0x178] sm:$0xff]   ;;  %p1679_p0 = por %p1678_p10, %p1677_p8 }
  0x4e   : > { %1370 = vmatpush3.bf16.msra.mxu1 %v1547_v11  ;;  %v244_v31 = vld [vmem:[#allocation2 + $0x8] sm:$0xff]  ;;  %v243_v35 = vld [vmem:[#allocation2] sm:$0xff]  ;;  %v246_v39 = vld [vmem:[#allocation2 + $0x18] sm:$0xff] }
  0x4f   : > { %1371 = vmatprep.subr.bf16.mxu1 %v1550_v14  ;;  %v264_v33 = vpack.c.bf16 %v254_v32, %v244_v31  ;;  %v263_v37 = vpack.c.bf16 %v253_v36, %v243_v35  ;;  %v256_v40 = vld [vmem:[#allocation2 + $0x68] sm:$0xff]  ;;  %v1569_v42 = vld [vmem:[%s1904_s26 + $0x138] sm:$0xff]   ;;  %v245_v43 = vld [vmem:[#allocation2 + $0x10] sm:$0xff]  ;;  %p1680_p1 = pnand %p1679_p0, %p1673_p6 }
  0x50   : > { %1350 = vmatpush3.bf16.msra.mxu0 %v1549_v13  ;;  %v266_v41 = vpack.c.bf16 %v256_v40, %v246_v39  ;;  %v255_v44 = vld [vmem:[#allocation2 + $0x60] sm:$0xff]  ;;  %v1570_v46 = vld [vmem:[%s1904_s26 + $0x1f8] sm:$0xff]   ;;  %v1572_v48 = vld [vmem:[%s1904_s26 + $0x170] sm:$0xff]  }
  0x51   : > { %1351 = vmatprep.subr.bf16.mxu0 %v1552_v16  ;;  %952 = vmatprep.mubr.bf16.mxu0 %v264_v33  ;;  %v265_v45 = vpack.c.bf16 %v255_v44, %v245_v43  ;;  %v1571_v47 = vld [vmem:[%s1904_s26 + $0x1b8] sm:$0xff]   ;;  %v1573_v49 = vld [vmem:[%s1904_s26 + $0x130] sm:$0xff]   ;;  %v1576_v52 = vld [vmem:[%s1904_s26 + $0x168] sm:$0xff]  }
  0x52   : > { %1372 = vmatpush3.bf16.msra.mxu1 %v1551_v15  ;;  %993 = vmatprep.mubr.bf16.mxu1 %v266_v41  ;;  %v1574_v50 = vld [vmem:[%s1904_s26 + $0x1f0] sm:$0xff]   ;;  %v1577_v53 = vld [vmem:[%s1904_s26 + $0x128] sm:$0xff]   ;;  %v1580_v56 = vld [vmem:[%s1904_s26 + $0x160] sm:$0xff]  }
  0x53   : > { %1373 = vmatprep.subr.bf16.mxu1 %v1554_v18  ;;  %v1575_v51 = vld [vmem:[%s1904_s26 + $0x1b0] sm:$0xff]   ;;  %v1578_v54 = vld [vmem:[%s1904_s26 + $0x1e8] sm:$0xff]   ;;  %v1581_v57 = vld [vmem:[%s1904_s26 + $0x120] sm:$0xff]  }
  0x54   : > { %1352 = vmatpush3.bf16.msra.mxu0 %v1553_v17  ;;  %v1579_v55 = vld [vmem:[%s1904_s26 + $0x1a8] sm:$0xff]   ;;  %v1582_v58 = vld [vmem:[%s1904_s26 + $0x1e0] sm:$0xff]   ;;  %v1584_v60 = vld [vmem:[%s1904_s26 + $0x158] sm:$0xff]  }
  0x55   : > { %1353 = vmatprep.subr.bf16.mxu0 %v1556_v20  ;;  %v1583_v59 = vld [vmem:[%s1904_s26 + $0x1a0] sm:$0xff]   ;;  %v1585_v61 = vld [vmem:[%s1904_s26 + $0x118] sm:$0xff]   ;;  %v1588_v0 = vld [vmem:[%s1904_s26 + $0x150] sm:$0xff]  }
  0x56   : > { %1374 = vmatpush3.bf16.msra.mxu1 %v1555_v19  ;;  %v1586_v62 = vld [vmem:[%s1904_s26 + $0x1d8] sm:$0xff]   ;;  %v1589_v1 = vld [vmem:[%s1904_s26 + $0x110] sm:$0xff]   ;;  %v1592_v4 = vld [vmem:[%s1904_s26 + $0x148] sm:$0xff]  }
  0x57   : > { %1375 = vmatprep.subr.bf16.mxu1 %v1558_v22  ;;  %v1587_v63 = vld [vmem:[%s1904_s26 + $0x198] sm:$0xff]   ;;  %v1590_v2 = vld [vmem:[%s1904_s26 + $0x1d0] sm:$0xff]   ;;  %v1593_v5 = vld [vmem:[%s1904_s26 + $0x108] sm:$0xff]  }
  0x58   : > { %1354 = vmatpush3.bf16.msra.mxu0 %v1557_v21  ;;  %v1591_v3 = vld [vmem:[%s1904_s26 + $0x190] sm:$0xff]   ;;  %v1594_v6 = vld [vmem:[%s1904_s26 + $0x1c8] sm:$0xff]   ;;  %v1596_v8 = vld [vmem:[%s1904_s26 + $0x140] sm:$0xff]  }
  0x59   : > { %1355 = vmatprep.subr.bf16.mxu0 %v1560_v24  ;;  %v1595_v7 = vld [vmem:[%s1904_s26 + $0x188] sm:$0xff]   ;;  %v1597_v9 = vld [vmem:[%s1904_s26 + $0x100] sm:$0xff]   ;;  %v258_v12 = vld [vmem:[#allocation2 + $0x78] sm:$0xff] }
  0x5a   : > { %1376 = vmatpush3.bf16.msra.mxu1 %v1559_v23  ;;  %v1598_v10 = vld [vmem:[%s1904_s26 + $0x1c0] sm:$0xff]   ;;  %v248_v11 = vld [vmem:[#allocation2 + $0x28] sm:$0xff]  ;;  %v257_v16 = vld [vmem:[#allocation2 + $0x70] sm:$0xff] }
  0x5b   : > { %1377 = vmatprep.subr.bf16.mxu1 %v1562_v26  ;;  %v268_v13 = vpack.c.bf16 %v258_v12, %v248_v11  ;;  %v1599_v14 = vld [vmem:[%s1904_s26 + $0x180] sm:$0xff]   ;;  %v1600_v18 = vld [vmem:[%s1904_s26 + $0x278] sm:$0xff]   ;;  %v260_v20 = vld [vmem:[#allocation2 + $0x88] sm:$0xff] }
  0x5c   : > { %1356 = vmatpush3.bf16.msra.mxu0 %v1561_v25  ;;  %v247_v15 = vld [vmem:[#allocation2 + $0x20] sm:$0xff]  ;;  %v250_v19 = vld [vmem:[#allocation2 + $0x38] sm:$0xff]  ;;  %v249_v23 = vld [vmem:[#allocation2 + $0x30] sm:$0xff] }
  0x5d   : > { %1357 = vmatprep.subr.bf16.mxu0 %v1564_v28  ;;  %v267_v17 = vpack.c.bf16 %v257_v16, %v247_v15  ;;  %v270_v21 = vpack.c.bf16 %v260_v20, %v250_v19  ;;  %v1601_v22 = vld [vmem:[%s1904_s26 + $0x238] sm:$0xff]   ;;  %v259_v24 = vld [vmem:[#allocation2 + $0x80] sm:$0xff]  ;;  %v1602_v26 = vld [vmem:[%s1904_s26 + $0x270] sm:$0xff]  }
  0x5e   : > { %1378 = vmatpush3.bf16.msra.mxu1 %v1563_v27  ;;  %v269_v25 = vpack.c.bf16 %v259_v24, %v249_v23  ;;  %v1603_v27 = vld [vmem:[%s1904_s26 + $0x230] sm:$0xff]   ;;  %v1604_v28 = vld [vmem:[%s1904_s26 + $0x268] sm:$0xff]   ;;  %v1607_v31 = vld [vmem:[%s1904_s26 + $0x220] sm:$0xff]  }
  0x5f   : > { %1379 = vmatprep.subr.bf16.mxu1 %v1566_v30  ;;  %v1606_v30 = vld [vmem:[%s1904_s26 + $0x260] sm:$0xff]   ;;  %v1608_v32 = vld [vmem:[%s1904_s26 + $0x258] sm:$0xff]   ;;  %v252_v35 = vld [vmem:[#allocation2 + $0x48] sm:$0xff] }
  0x60   : > { %1358 = vmatpush3.bf16.msra.mxu0 %v1565_v29  ;;  %v1605_v29 = vld [vmem:[%s1904_s26 + $0x228] sm:$0xff]   ;;  %v1609_v33 = vld [vmem:[%s1904_s26 + $0x218] sm:$0xff]   ;;  %v1614_v41 = vld [vmem:[%s1904_s26 + $0x240] sm:$0xff]  }
  0x61   : > { %1387 = vmatprep.subr.bf16.mxu0 %v1568_v38  ;;  %v262_v36 = vld [vmem:[#allocation2 + $0x98] sm:$0xff]  ;;  %v1611_v38 = vld [vmem:[%s1904_s26 + $0x210] sm:$0xff]   ;;  %v1612_v39 = vld [vmem:[%s1904_s26 + $0x248] sm:$0xff]  }
  0x62   : > { %1380 = vmatpush3.bf16.msra.mxu1 %v1567_v34  ;;  %v1610_v34 = vld [vmem:[%s1904_s26 + $0x250] sm:$0xff]   ;;  %v1613_v40 = vld [vmem:[%s1904_s26 + $0x208] sm:$0xff]   ;;  %v251_v43 = vld [vmem:[#allocation2 + $0x40] sm:$0xff] }
  0x63   : > { %953 = vmatmul.mubr.bf16.vlgmr.msra.gmra.mxu0 %v263_v37  ;;  %1409 = vmatprep.subr.bf16.mxu1 %v1570_v46  ;;  %v272_v37 = vpack.c.bf16 %v262_v36, %v252_v35  ;;  %v261_v44 = vld [vmem:[#allocation2 + $0x90] sm:$0xff] }
  0x64   : > { %1388 = vmatpush3.bf16.msra.mxu0 %v1569_v42  ;;  %1034 = vmatprep.mubr.bf16.mxu0 %v268_v13  ;;  %v1615_v42 = vld [vmem:[%s1904_s26 + $0x200] sm:$0xff]  }
  0x65   : > { %994 = vmatmul.mubr.bf16.vlgmr.msra.gmra.mxu1 %v265_v45  ;;  %1389 = vmatprep.subr.bf16.mxu0 %v1572_v48  ;;  %v271_v45 = vpack.c.bf16 %v261_v44, %v251_v43 }
  0x66   : > { %1410 = vmatpush3.bf16.msra.mxu1 %v1571_v47  ;;  %1075 = vmatprep.mubr.bf16.mxu1 %v270_v21 }
  0x67   : > { %1411 = vmatprep.subr.bf16.mxu1 %v1574_v50 }
  0x68   : > { %1390 = vmatpush3.bf16.msra.mxu0 %v1573_v49 }
  0x69   : > { %1391 = vmatprep.subr.bf16.mxu0 %v1576_v52 }
  0x6a   : > { %1412 = vmatpush3.bf16.msra.mxu1 %v1575_v51 }
  0x6b   : > { %1413 = vmatprep.subr.bf16.mxu1 %v1578_v54 }
  0x6c   : > { %1392 = vmatpush3.bf16.msra.mxu0 %v1577_v53 }
  0x6d   : > { %1393 = vmatprep.subr.bf16.mxu0 %v1580_v56 }
  0x6e   : > { %1414 = vmatpush3.bf16.msra.mxu1 %v1579_v55 }
  0x6f   : > { %1415 = vmatprep.subr.bf16.mxu1 %v1582_v58  ;;  %v1258_v58 = vld [vmem:[%s240_s25] ss:$0 sm:$0xff] }
  0x70   : > { %1394 = vmatpush3.bf16.msra.mxu0 %v1581_v57 }
  0x71   : > { %1395 = vmatprep.subr.bf16.mxu0 %v1584_v60 }
  0x72   : > { %1416 = vmatpush3.bf16.msra.mxu1 %v1583_v59 }
  0x73   : > { %1417 = vmatprep.subr.bf16.mxu1 %v1586_v62 }
  0x74   : > { %1396 = vmatpush3.bf16.msra.mxu0 %v1585_v61 }
  0x75   : > { %1397 = vmatprep.subr.bf16.mxu0 %v1588_v0 }
  0x76   : > { %1418 = vmatpush3.bf16.msra.mxu1 %v1587_v63 }
  0x77   : > { %1419 = vmatprep.subr.bf16.mxu1 %v1590_v2 }
  0x78   : > { %1398 = vmatpush3.bf16.msra.mxu0 %v1589_v1 }
  0x79   : > { %1399 = vmatprep.subr.bf16.mxu0 %v1592_v4 }
  0x7a   : > { %1420 = vmatpush3.bf16.msra.mxu1 %v1591_v3 }
  0x7b   : > { %1421 = vmatprep.subr.bf16.mxu1 %v1594_v6 }
  0x7c   : > { %1400 = vmatpush3.bf16.msra.mxu0 %v1593_v5 }
  0x7d   : > { %1401 = vmatprep.subr.bf16.mxu0 %v1596_v8 }
  0x7e   : > { %1422 = vmatpush3.bf16.msra.mxu1 %v1595_v7 }
  0x7f   : > { %1423 = vmatprep.subr.bf16.mxu1 %v1598_v10 }
  0x80   : > { %1402 = vmatpush3.bf16.msra.mxu0 %v1597_v9 }
  0x81   : > { %1431 = vmatprep.subr.bf16.mxu0 %v1600_v18 }
  0x82   : > { %1424 = vmatpush3.bf16.msra.mxu1 %v1599_v14 }
  0x83   : > { %1035 = vmatmul.mubr.bf16.vlgmr.msra.gmra.mxu0 %v267_v17 }
  0x84   : > { %1432 = vmatpush3.bf16.msra.mxu0 %v1601_v22  ;;  %1116 = vmatprep.mubr.bf16.mxu0 %v272_v37 }
  0x85   : > { %1076 = vmatmul.mubr.bf16.vlgmr.msra.gmra.mxu1 %v269_v25  ;;  %1433 = vmatprep.subr.bf16.mxu0 %v1602_v26 }
  0x88   : > { %1434 = vmatpush3.bf16.msra.mxu0 %v1603_v27 }
  0x89   : > { %1435 = vmatprep.subr.bf16.mxu0 %v1604_v28 }
  0x8c   : > { %1436 = vmatpush3.bf16.msra.mxu0 %v1605_v29 }
  0x8d   : > { %1437 = vmatprep.subr.bf16.mxu0 %v1606_v30 }
  0x90   : > { %1438 = vmatpush3.bf16.msra.mxu0 %v1607_v31 }
  0x91   : > { %1439 = vmatprep.subr.bf16.mxu0 %v1608_v32 }
  0x94   : > { %1440 = vmatpush3.bf16.msra.mxu0 %v1609_v33 }
  0x95   : > { %1441 = vmatprep.subr.bf16.mxu0 %v1610_v34 }
  0x98   : > { %1442 = vmatpush3.bf16.msra.mxu0 %v1611_v38 }
  0x99   : > { %1443 = vmatprep.subr.bf16.mxu0 %v1612_v39 }
  0x9c   : > { %1444 = vmatpush3.bf16.msra.mxu0 %v1613_v40 }
  0x9d   : > { %1445 = vmatprep.subr.bf16.mxu0 %v1614_v41 }
  0xa0   : > { %1446 = vmatpush3.bf16.msra.mxu0 %v1615_v42 }
  0xa3   : > { %1117 = vmatmul.mubr.bf16.vlgmr.msra.gmra.mxu0 %v271_v45 }
 0x123   : > { %v1359_v46 = vpop.f32.mrf.mxu0 }
 0x125   : > { %v1360_v47 = vpop.f32.mrf.mxu0  ;;  %v1381_v48 = vpop.f32.mrf.mxu1 }
 0x126   : > { %v1361_v57 = vadd.f32 %v1360_v47, %v1359_v46 }
 0x127   : > { %v1362_v49 = vpop.f32.mrf.mxu0  ;;  %v1382_v50 = vpop.f32.mrf.mxu1 }
 0x128   : > { %v955_v61 = vadd.f32 %v1361_v57, %v1258_v58  ;;  %v1383_v62 = vadd.f32 %v1382_v50, %v1381_v48 }
 0x129   : > { %v1363_v51 = vpop.f32.mrf.mxu0  ;;  %v1384_v52 = vpop.f32.mrf.mxu1 }
 0x12a   : > { %v1364_v63 = vadd.f32 %v1363_v51, %v1362_v49  ;;  %v996_v3 = vadd.f32 %v1383_v62, %v955_v61 }
 0x12b   : > { %v1385_v54 = vpop.f32.mrf.mxu1 }
 0x12c   : > { %v958_v4 = vadd.f32 %v1364_v63, %v1258_v58  ;;  %v1386_v5 = vadd.f32 %v1385_v54, %v1384_v52 }
 0x12e   : > { %v999_v11 = vadd.f32 %v1386_v5, %v958_v4 }
 0x143   : > { %v1403_v53 = vpop.f32.mrf.mxu0 }
 0x145   : > { %v1404_v55 = vpop.f32.mrf.mxu0  ;;  %v1425_v56 = vpop.f32.mrf.mxu1 }
 0x146   : > { %v1405_v0 = vadd.f32 %v1404_v55, %v1403_v53 }
 0x147   : > { %v1406_v59 = vpop.f32.mrf.mxu0  ;;  %v1426_v60 = vpop.f32.mrf.mxu1 }
 0x148   : > { %v1037_v6 = vadd.f32 %v1405_v0, %v996_v3  ;;  %v1427_v7 = vadd.f32 %v1426_v60, %v1425_v56 }
 0x149   : > { %v1407_v1 = vpop.f32.mrf.mxu0  ;;  %v1428_v2 = vpop.f32.mrf.mxu1 }
 0x14a   : > { %v1408_v8 = vadd.f32 %v1407_v1, %v1406_v59  ;;  %v1078_v13 = vadd.f32 %v1427_v7, %v1037_v6 }
 0x14b   : > { %v1429_v9 = vpop.f32.mrf.mxu1 }
 0x14c   : > { %v1040_v14 = vadd.f32 %v1408_v8, %v999_v11  ;;  %v1430_v15 = vadd.f32 %v1429_v9, %v1428_v2 }
 0x14e   : > { %v1081_v20 = vadd.f32 %v1430_v15, %v1040_v14 }
 0x163   : > { %v1447_v10 = vpop.f32.mrf.mxu0 }
 0x165   : > { %v1448_v12 = vpop.f32.mrf.mxu0 }
 0x166   : > { %v1449_v16 = vadd.f32 %v1448_v12, %v1447_v10 }
 0x167   : > { %v1450_v17 = vpop.f32.mrf.mxu0 }
 0x168   : > { %v1119_v18 = vadd.f32 %v1449_v16, %v1078_v13 }
 0x169   : > { %v1451_v19 = vpop.f32.mrf.mxu0 }
 0x16a   : > { %1125 = vst [vmem:[%s236_s4] sm:$0xff] %v1119_v18  ;;  %v1452_v21 = vadd.f32 %v1451_v19, %v1450_v17 }
 0x16c   : > { %v1122_v22 = vadd.f32 %v1452_v21, %v1081_v20 }
 0x16e   : > { %1126 = vst [vmem:[%s236_s4 + $0x8] sm:$0xff] %v1122_v22 }
 0x16f   : > { %1683 = shalt.err (!%p1680_p1)
}
 0x170   : > { %s1684_s19 = scalar_lea.hbm %s2002_s7, 256  ;;  %s1688_s17 = scalar_lea.hbm %s2053_s3, 512 }
 0x171   : > { %p1685_p5 = scmp.ne.s32.totalorder %s2002_s7, %s1684_s19  ;;  %p1689_p11 = scmp.lt.s32.totalorder %s2002_s7, %s2053_s3 }
 0x172   : > { %p1690_p2 = scmp.lt.s32.totalorder %s1688_s17, %s1684_s19 }
 0x173   : > { %p1686_p7 = pnand %p1685_p5, %p2070_p13 }
 0x174   : > { %p1691_p3 = por %p1690_p2, %p1689_p11 }
 0x175   : > { %p1687_p9 = pneg %p1686_p7 }
 0x177   : > { %p1692_p12 = pnand %p1691_p3, %p1687_p9 }
 0x179   : > { %1695 = shalt.err (!%p1692_p12)
}
 0x17a   : > { %s1764_s25 = smov 128   ;;  %s1765_s29 = smov 256  }
 0x17b   : > { %s1766_s4 = smov 8  }
 0x17c   : > { %1461 = dma.vmem_to_hbm [thread:$0]  (%p2070_p13), %s1997_s28, 256, %s2002_s7, %s1128_s8, %s1764_s25, %s1765_s29, %s1766_s4  }
 0x17d PF: > { %s2071_s27 = sld [smem:[#allocation12_spill]]  ;;  %s1158_s6 = sand.u32 1, %s1734_s12  }
 0x17e   : > { %s2072_s5 = sld [smem:[#allocation11_spill]]  ;;  %s1159_s11 = scalar_lea.sflag [#allocation4], %s1158_s6 }
 0x183   : > { %p2073_p4 = scmp.ne.s32.totalorder %s2071_s27, 0 }
 0x184   : > { %p2074_p6 = scmp.ge.s32.totalorder %s2072_s5, 2 }
 0x186   : > { %p1472_p8 = pnand %p2074_p6, %p2073_p4 }
 0x188   : > { %p1473_p10 = pneg %p1472_p8 }
 0x18a   : > { %1729 = dma.done.wait (%p1473_p10), %s1159_s11, 256  }
 0x18b   : > { %1731 = vsyncadd (%p1473_p10), %s1159_s11, 4294967040  ;;  %s20_s17 = sadd.s32 1, %s2072_s5   ;;  %s2075_s12 = smov %s1738_s13 }
 0x18c   : > { %p17_p0 = scmp.ge.s32.totalorder %s20_s17, 4   ;;  %s2076_s13 = smov %s1742_s14 }
 0x18d   : > { %s2077_s14 = smov %s1887_s24  ;;  %s2078_s15 = smov %s1750_s16 }
 0x18e   : > { %s2079_s16 = smov %s2081_s30  ;;  %19 = sbr.rel (!%p17_p0) target bundleno = 7 (0x7), region = 86 }
 0x193   :  { %1164 = vsyncpa [#allocation3], 1 }
 0x194   :  { %1166 = vsyncpa [#allocation3 + $0x1], 1 }
 0x195   :  { %1167 = vsyncpa [#allocation6], 1 }
 0x196   :  { %1169 = vsyncpa [#allocation6 + $0x1], 1 }
 0x197   :  { %1170 = vsyncpa [#allocation4], 1 }
 0x198   :  { %1172 = vsyncpa [#allocation4 + $0x1], 1 }

</bundles_post_ra>
